<compile_context>
chip_gen: v7x
topology: tpu7x:2x2x1
jax: 0.10.0
libtpu: 0.0.40
codegen_flags: <defaults>
</compile_context>

<pallas_src>
import jax
import jax.numpy as jnp
from jax.experimental import pallas as pl
from jax.experimental.pallas import tpu as pltpu


def weighted_pooling_kernel(h_ref, mask_ref, w1_ref, b1_ref, w2_ref, b2_ref, o_ref):
    # h_ref:    (BT, S, H)  hidden-state block (native dtype, never up-cast)
    # mask_ref: (BT, S)     attention mask, lane-dense (0 => masked out), f32
    # w1_ref:   (H, 128), b1_ref: (1, 128)   -- in h's dtype
    # w2_ref:   (1, 128)    second Linear's weight as a row (VPU path, no MXU)
    # b2_ref:   (1, 1)
    # o_ref:    (BT, H)     pooled output slab (sublane-dense store)
    BT, S, H = h_ref.shape
    A = w1_ref.shape[1]                              # attention width (128)

    h = h_ref[...]                                   # (BT, S, H)

    # ---- attention MLP: Linear(H->128) on the MXU, f32 accumulation ---------
    # Leading-dim merge only (a pure view when S is a multiple of the sublane
    # packing: 8 for f32, 16 for bf16); feeds the MXU with M = BT*S rows.
    h2 = h.reshape(BT * S, H)
    a1 = jnp.dot(h2, w1_ref[...], preferred_element_type=jnp.float32)
    a1 = jnp.tanh(a1 + b1_ref[...])                  # (BT*S, 128) f32
    a1 = a1.reshape(BT, S, A)                        # (BT, S, 128)

    # ---- Linear(128->1) as a VPU multiply + lane reduce (skip N=1 matmul) ---
    logits = jnp.sum(a1 * w2_ref[...], axis=-1) + b2_ref[...]     # (BT, S) f32

    # ---- masked_fill(attention_mask == 0, -1e9) ------------------------------
    logits = jnp.where(mask_ref[...] == 0.0, jnp.float32(-1000000000.0), logits)

    # ---- exact softmax over the sequence (lane) axis -------------------------
    m = jnp.max(logits, axis=-1, keepdims=True)      # (BT, 1)
    e = jnp.exp(logits - m)                          # (BT, S)
    w = e / jnp.sum(e, axis=-1, keepdims=True)       # (BT, S), exact divide

    # ---- weighted sum over S: multiply in h's dtype, accumulate in f32 ------
    pooled = jnp.sum(w.astype(h.dtype)[:, :, None] * h, axis=1, dtype=jnp.float32)
    o_ref[...] = pooled.astype(o_ref.dtype)          # dense (BT, H) store


def _choose_block_b(B, S, H, h_itemsize):
    """Pick the batch-block size BT and a matching vmem_limit_bytes.

    The op is HBM-bandwidth bound, so the lever is big tiles: target multiple
    MiB of hidden-state bytes per buffer, clamped by a generation-aware VMEM
    budget that also accounts for the in-kernel f32 intermediates.
    """
    vmem_cap = 64 * 1024 * 1024                       # conservative default (v7x)
    try:
        info = pltpu.get_tpu_info()
        vmem_cap = int(getattr(info, "vmem_capacity_bytes", vmem_cap))
    except Exception:
        pass
    # Scoped limit handed to the compiler: ~3/4 of physical, capped at 96 MiB
    # (-> ~96 MiB on v5e/v6e's 128 MiB, ~48 MiB on v7x's 64 MiB).
    vmem_limit = min((vmem_cap * 3) // 4, 96 * 1024 * 1024)
    # Budget for per-step data; leave ~half the limit as compiler headroom.
    budget = vmem_limit // 2

    # Per-batch-row VMEM bytes per grid step.
    per_row = (
        2 * S * H * h_itemsize        # double-buffered hidden-state block
        + S * H * h_itemsize          # w*h product (h dtype)
        + 4 * S * H                   # f32 copy of the product for the reduce
        + 4 * S * 128                 # a1 attention activations (f32)
        + 8 * 4 * S                   # logits / exp / mask temporaries
        + 4 * 4 * H                   # output block + f32 accumulator
    )
    # Grid-invariant params (double-buffered by the pipeline; kept default
    # buffering rather than pipeline_mode=Buffered(1) -- accounted for here).
    fixed = 2 * (H * 128 + 3 * 128) * h_itemsize + 2 * S * 4

    cap = max(1, (budget - fixed) // per_row)

    # Target >= ~4 MiB of hidden-state bytes per buffer, not a row count.
    target = max(1, pl.cdiv(4 * 1024 * 1024, S * H * h_itemsize))

    bt = min(int(target), int(cap), B)
    if bt >= B:
        return B, vmem_limit
    # Keep >= 2 grid steps so ("parallel",) can shard the batch over both v7x
    # TensorCores; prefer an 8-aligned sublane dim for the (BT,S)/(BT,H) blocks.
    bt = min(bt, max(1, pl.cdiv(B, 2)))
    if bt >= 8:
        bt = (bt // 8) * 8
    return max(1, min(bt, B)), vmem_limit


def weighted_pooling(hidden_states, attention_mask, w1, b1, w2, b2):
    B, S, H = hidden_states.shape
    A = w1.shape[1]                                    # 128 per the module
    dt = hidden_states.dtype
    itemsize = jnp.dtype(dt).itemsize

    BT, vmem_limit = _choose_block_b(B, S, H, itemsize)
    grid = (pl.cdiv(B, BT),)                           # ragged last block OK

    mask2 = attention_mask.astype(jnp.float32)         # (B, S), lane-dense
    # Cast params to the activation dtype so bf16 activations stay bf16 on the
    # MXU (bf16 x bf16 -> f32 accumulate via preferred_element_type).
    w1c = w1.astype(dt)                                # (H, 128)
    b1_2d = b1.reshape(1, A).astype(dt)                # (1, 128)
    w2_row = w2.reshape(1, A).astype(dt)               # (128, 1) -> (1, 128) row
    b2_2d = b2.reshape(1, 1).astype(dt)                # (1, 1)

    return pl.pallas_call(
        weighted_pooling_kernel,
        out_shape=jax.ShapeDtypeStruct((B, H), dt),
        grid_spec=pltpu.PrefetchScalarGridSpec(
            num_scalar_prefetch=0,
            grid=grid,
            in_specs=[
                pl.BlockSpec((BT, S, H), lambda b: (b, 0, 0)),   # hidden_states
                pl.BlockSpec((BT, S), lambda b: (b, 0)),         # mask (lane-dense)
                pl.BlockSpec((H, A), lambda b: (0, 0)),          # W1
                pl.BlockSpec((1, A), lambda b: (0, 0)),          # b1
                pl.BlockSpec((1, A), lambda b: (0, 0)),          # W2 as a row
                pl.BlockSpec((1, 1), lambda b: (0, 0)),          # b2
            ],
            out_specs=pl.BlockSpec((BT, H), lambda b: (b, 0)),   # (BT,H) dense slab
        ),
        compiler_params=pltpu.CompilerParams(
            dimension_semantics=("parallel",),                   # megacore on v7x
            vmem_limit_bytes=int(vmem_limit),                    # generation-aware
        ),
    )(hidden_states, mask2, w1c, b1_2d, w2_row, b2_2d)


def weighted_pooling_ref(hidden_states, attention_mask, w1, b1, w2, b2):
    # Pure-JAX reference mirroring the PyTorch forward.
    a1 = jnp.tanh(hidden_states @ w1 + b1)                  # (B, S, 128)
    weights = (a1 @ w2 + b2)[..., 0]                        # (B, S)
    weights = jnp.where(attention_mask == 0, -1000000000.0, weights)
    weights = jax.nn.softmax(weights, axis=-1)[..., None]   # (B, S, 1)
    return jnp.sum(weights * hidden_states, axis=1)         # (B, H)


if __name__ == "__main__":
    # Use full-f32 matmuls in the pure-JAX reference so the comparison is not
    # polluted by XLA's default bf16-pass f32 matmul on TPU.
    jax.config.update("jax_default_matmul_precision", "highest")

    B, S, H = 2, 8, 32

    key = jax.random.PRNGKey(0)
    k_h, k_w1, k_b1, k_w2, k_b2 = jax.random.split(key, 5)

    hidden_states = jax.random.normal(k_h, (B, S, H), dtype=jnp.float32)
    # attention mask: ones with a couple of trailing zeros (padding)
    attention_mask = jnp.concatenate(
        [jnp.ones((B, S - 2), jnp.float32), jnp.zeros((B, 2), jnp.float32)], axis=1
    )

    # Deterministic parameters (shapes from nn.Linear(H,128), nn.Linear(128,1))
    w1 = jax.random.normal(k_w1, (H, 128), dtype=jnp.float32) * (1.0 / H ** 0.5)
    b1 = jax.random.normal(k_b1, (128,), dtype=jnp.float32) * 0.01
    w2 = jax.random.normal(k_w2, (128, 1), dtype=jnp.float32) * (1.0 / 128 ** 0.5)
    b2 = jax.random.normal(k_b2, (1,), dtype=jnp.float32) * 0.01

    out = weighted_pooling(hidden_states, attention_mask, w1, b1, w2, b2)
    out = jax.block_until_ready(out)

    ref = weighted_pooling_ref(hidden_states, attention_mask, w1, b1, w2, b2)
    assert out.shape == (B, H)
    assert jnp.allclose(out, ref, atol=1e-3, rtol=1e-3), "mismatch vs reference"

    print("KERNEL_OK")
</pallas_src>

<mosaic_0001>
module attributes {stable_mosaic.version = 11 : i64} {
  func.func @weighted_pooling_kernel(%arg0: i32, %arg1: memref<2x8x32xf32, #tpu.memory_space<vmem>>, %arg2: memref<2x8xf32, #tpu.memory_space<vmem>>, %arg3: memref<32x128xf32, #tpu.memory_space<vmem>>, %arg4: memref<1x128xf32, #tpu.memory_space<vmem>>, %arg5: memref<1x128xf32, #tpu.memory_space<vmem>>, %arg6: memref<1x1xf32, #tpu.memory_space<vmem>>, %arg7: memref<2x32xf32, #tpu.memory_space<vmem>>) attributes {dimension_semantics = [#tpu.dimension_semantics<parallel>], iteration_bounds = array<i64: 1>, scalar_prefetch = 0 : i64, scratch_operands = 0 : i64, tpu.core_type = #tpu.core_type<tc>, window_params = [{transform_indices = @transform_0, window_bounds = array<i64: 2, 8, 32>}, {transform_indices = @transform_1, window_bounds = array<i64: 2, 8>}, {pipeline_mode = #tpu.pipeline_mode<synchronous>, transform_indices = @transform_2, window_bounds = array<i64: 32, 128>}, {pipeline_mode = #tpu.pipeline_mode<synchronous>, transform_indices = @transform_3, window_bounds = array<i64: 1, 128>}, {pipeline_mode = #tpu.pipeline_mode<synchronous>, transform_indices = @transform_4, window_bounds = array<i64: 1, 128>}, {pipeline_mode = #tpu.pipeline_mode<synchronous>, transform_indices = @transform_5, window_bounds = array<i64: 1, 1>}, {transform_indices = @transform_6, window_bounds = array<i64: 2, 32>}]} {
    %c0 = arith.constant 0 : index
    %c0_0 = arith.constant 0 : index
    %c0_1 = arith.constant 0 : index
    %0 = vector.load %arg1[%c0, %c0_0, %c0_1] : memref<2x8x32xf32, #tpu.memory_space<vmem>>, vector<2x8x32xf32>
    %1 = vector.shape_cast %0 : vector<2x8x32xf32> to vector<16x32xf32>
    %c0_2 = arith.constant 0 : index
    %c0_3 = arith.constant 0 : index
    %2 = vector.load %arg3[%c0_2, %c0_3] : memref<32x128xf32, #tpu.memory_space<vmem>>, vector<32x128xf32>
    %cst = arith.constant dense<0.000000e+00> : vector<16x128xf32>
    %3 = tpu.matmul %1, %2, %cst {dimension_numbers = #tpu.dot_dimension_numbers<[1], [0], [0], [1], [0, 0, 1, 1], [], []>, precision = #tpu.contract_precision<fp32>} : vector<16x32xf32>, vector<32x128xf32>, vector<16x128xf32> -> vector<16x128xf32>
    %c0_4 = arith.constant 0 : index
    %c0_5 = arith.constant 0 : index
    %4 = vector.load %arg4[%c0_4, %c0_5] : memref<1x128xf32, #tpu.memory_space<vmem>>, vector<1x128xf32>
    %5 = vector.broadcast %4 : vector<1x128xf32> to vector<16x128xf32>
    %6 = arith.addf %3, %5 : vector<16x128xf32>
    %7 = math.tanh %6 : vector<16x128xf32>
    %8 = vector.shape_cast %7 : vector<16x128xf32> to vector<2x8x128xf32>
    %c0_6 = arith.constant 0 : index
    %c0_7 = arith.constant 0 : index
    %9 = vector.load %arg5[%c0_6, %c0_7] : memref<1x128xf32, #tpu.memory_space<vmem>>, vector<1x128xf32>
    %10 = vector.shape_cast %9 : vector<1x128xf32> to vector<1x1x128xf32>
    %11 = vector.broadcast %10 : vector<1x1x128xf32> to vector<2x8x128xf32>
    %12 = arith.mulf %8, %11 : vector<2x8x128xf32>
    %cst_8 = arith.constant dense<0.000000e+00> : vector<2x8xf32>
    %13 = vector.multi_reduction <add>, %12, %cst_8 [2] : vector<2x8x128xf32> to vector<2x8xf32>
    %c0_9 = arith.constant 0 : index
    %c0_10 = arith.constant 0 : index
    %14 = vector.load %arg6[%c0_9, %c0_10] : memref<1x1xf32, #tpu.memory_space<vmem>>, vector<1x1xf32>
    %15 = vector.broadcast %14 : vector<1x1xf32> to vector<2x8xf32>
    %16 = arith.addf %13, %15 : vector<2x8xf32>
    %c0_11 = arith.constant 0 : index
    %c0_12 = arith.constant 0 : index
    %17 = vector.load %arg2[%c0_11, %c0_12] : memref<2x8xf32, #tpu.memory_space<vmem>>, vector<2x8xf32>
    %cst_13 = arith.constant 0.000000e+00 : f32
    %18 = vector.broadcast %cst_13 : f32 to vector<2x8xf32>
    %19 = arith.cmpf oeq, %17, %18 : vector<2x8xf32>
    %cst_14 = arith.constant -1.000000e+09 : f32
    %20 = vector.broadcast %cst_14 : f32 to vector<2x8xf32>
    %21 = arith.select %19, %20, %16 : vector<2x8xi1>, vector<2x8xf32>
    %cst_15 = arith.constant dense<0xFF800000> : vector<2xf32>
    %22 = vector.multi_reduction <maximumf>, %21, %cst_15 [1] : vector<2x8xf32> to vector<2xf32>
    %23 = vector.shape_cast %22 : vector<2xf32> to vector<2x1xf32>
    %24 = vector.broadcast %23 : vector<2x1xf32> to vector<2x8xf32>
    %25 = arith.subf %21, %24 : vector<2x8xf32>
    %26 = math.exp %25 : vector<2x8xf32>
    %cst_16 = arith.constant dense<0.000000e+00> : vector<2xf32>
    %27 = vector.multi_reduction <add>, %26, %cst_16 [1] : vector<2x8xf32> to vector<2xf32>
    %28 = vector.shape_cast %27 : vector<2xf32> to vector<2x1xf32>
    %29 = vector.broadcast %28 : vector<2x1xf32> to vector<2x8xf32>
    %30 = arith.divf %26, %29 : vector<2x8xf32>
    %31 = vector.shape_cast %30 : vector<2x8xf32> to vector<2x8x1xf32>
    %32 = vector.broadcast %31 : vector<2x8x1xf32> to vector<2x8x32xf32>
    %33 = arith.mulf %32, %0 : vector<2x8x32xf32>
    %cst_17 = arith.constant dense<0.000000e+00> : vector<2x32xf32>
    %34 = vector.multi_reduction <add>, %33, %cst_17 [1] : vector<2x8x32xf32> to vector<2x32xf32>
    %c0_18 = arith.constant 0 : index
    %c0_19 = arith.constant 0 : index
    %35 = vector.load %arg7[%c0_18, %c0_19] : memref<2x32xf32, #tpu.memory_space<vmem>>, vector<2x32xf32>
    tpu.vector_store %arg7[%c0_18, %c0_19], %34 {strides = array<i32>} : memref<2x32xf32, #tpu.memory_space<vmem>>, vector<2x32xf32>,
    return
  }
  func.func @transform_0(%arg0: i32) -> (i32, i32, i32) {
    %c0_i32 = arith.constant 0 : i32
    %c0_i32_0 = arith.constant 0 : i32
    %c0_i32_1 = arith.constant 0 : i32
    return %arg0, %c0_i32, %c0_i32_0 : i32, i32, i32
  }
  func.func @transform_1(%arg0: i32) -> (i32, i32) {
    %c0_i32 = arith.constant 0 : i32
    %c0_i32_0 = arith.constant 0 : i32
    return %arg0, %c0_i32 : i32, i32
  }
  func.func @transform_2(%arg0: i32) -> (i32, i32) {
    %c0_i32 = arith.constant 0 : i32
    %c0_i32_0 = arith.constant 0 : i32
    %c0_i32_1 = arith.constant 0 : i32
    return %c0_i32, %c0_i32_0 : i32, i32
  }
  func.func @transform_3(%arg0: i32) -> (i32, i32) {
    %c0_i32 = arith.constant 0 : i32
    %c0_i32_0 = arith.constant 0 : i32
    %c0_i32_1 = arith.constant 0 : i32
    return %c0_i32, %c0_i32_0 : i32, i32
  }
  func.func @transform_4(%arg0: i32) -> (i32, i32) {
    %c0_i32 = arith.constant 0 : i32
    %c0_i32_0 = arith.constant 0 : i32
    %c0_i32_1 = arith.constant 0 : i32
    return %c0_i32, %c0_i32_0 : i32, i32
  }
  func.func @transform_5(%arg0: i32) -> (i32, i32) {
    %c0_i32 = arith.constant 0 : i32
    %c0_i32_0 = arith.constant 0 : i32
    %c0_i32_1 = arith.constant 0 : i32
    return %c0_i32, %c0_i32_0 : i32, i32
  }
  func.func @transform_6(%arg0: i32) -> (i32, i32) {
    %c0_i32 = arith.constant 0 : i32
    %c0_i32_0 = arith.constant 0 : i32
    return %arg0, %c0_i32 : i32, i32
  }
}

</mosaic_0001>

<bundles_post_ra>
// kernel: tpu_custom_call.1
= control target key start
LH: loop header
LB: loop body
LE: loop exit
PB: predicated region body
PF: predicated region fallthrough
CT: control target
= control target key end

     0   :  { %s1079_s0 = inlined_call_operand.hbm [shape: f32[2,8,32], index: 0, kind: input, shape index: {}]   ;;  %s1080_s1 = inlined_call_operand.vmem [shape: f32[2,8], index: 1, kind: input, shape index: {}]   ;;  %s1081_s2 = inlined_call_operand.hbm [shape: f32[32,128], index: 2, kind: input, shape index: {}]   ;;  %s1082_s3 = inlined_call_operand.vmem [shape: f32[1,128], index: 3, kind: input, shape index: {}]   ;;  %s1083_s4 = inlined_call_operand.vmem [shape: f32[1,128], index: 4, kind: input, shape index: {}]   ;;  %s1084_s5 = inlined_call_operand.<no memory space> [shape: f32[1,1], index: 5, kind: input, shape index: {}]   ;;  %s1085_s6 = inlined_call_operand.hbm [shape: f32[2,32], index: 6, kind: output, shape index: {}]  }
   0x1   :  { %v11_v0 = vstv %s1084_s5 }
   0x2   :  { %12 = vst [vmem:[#allocation2] sm:$0x1] %v11_v0 }
   0x3   :  { %13 = vsyncpa [#allocation4], 0 }
   0x4   :  { %14 = vsyncpa [#allocation7], 0 }
   0x5   :  { %15 = vsyncpa [#allocation5], 0  ;;  %s964_s23 = smov [#allocation3]   ;;  %s892_s27 = scalar_lea.hbm %s1079_s0, 256 }
   0x6   :  { %s21_s24 = sshll.u32 %s964_s23, 4  ;;  %p893_p0 = scmp.ne.s32.totalorder %s1079_s0, %s892_s27  ;;  %s22_s24 = int_to_ptr.vmem [resolvable:$true] %s21_s24 }
   0x7   :  { %p896_p1 = scmp.lt.u32.totalorder %s892_s27, %s1079_s0 }
   0x9   :  { %p898_p2 = pnand %p896_p1, %p893_p0 }
   0xb   :  { %901 = shalt.err (!%p898_p2)
}
   0xc   :  { %s902_s5 = scalar_lea.vmem %s22_s24, 256  ;;  %p907_p4 = scmp.lt.s32.totalorder %s22_s24, %s22_s24 }
   0xd   :  { %p903_p3 = scmp.ne.s32.totalorder %s22_s24, %s902_s5  ;;  %p908_p5 = scmp.lt.s32.totalorder %s902_s5, %s902_s5 }
   0xf   :  { %p909_p6 = por %p908_p5, %p907_p4 }
  0x11   :  { %p910_p7 = pnand %p909_p6, %p903_p3 }
  0x13   :  { %913 = shalt.err (!%p910_p7)
}
  0x14   :  { %s965_s8 = smov 128   ;;  %s966_s9 = smov 8  }
  0x15   :  { %27 = dma.hbm_to_vmem [thread:$0]  %s1079_s0, 256, %s22_s24, [#allocation4], %s965_s8, %s965_s8, %s966_s9  }
  0x16   :  { %s967_s12 = smov [#allocation6]   ;;  %s914_s16 = scalar_lea.hbm %s1081_s2, 512 }
  0x17   :  { %s35_s13 = sshll.u32 %s967_s12, 4  ;;  %p915_p8 = scmp.ne.s32.totalorder %s1081_s2, %s914_s16  ;;  %s36_s13 = int_to_ptr.vmem [resolvable:$true] %s35_s13 }
  0x18   :  { %p918_p9 = scmp.lt.u32.totalorder %s914_s16, %s1081_s2 }
  0x1a   :  { %p920_p10 = pnand %p918_p9, %p915_p8 }
  0x1c   :  { %923 = shalt.err (!%p920_p10)
}
  0x1d   :  { %s924_s21 = scalar_lea.vmem %s36_s13, 512  ;;  %p929_p12 = scmp.lt.s32.totalorder %s36_s13, %s36_s13 }
  0x1e   :  { %p925_p11 = scmp.ne.s32.totalorder %s36_s13, %s924_s21  ;;  %p930_p13 = scmp.lt.s32.totalorder %s924_s21, %s924_s21 }
  0x20   :  { %p931_p0 = por %p930_p13, %p929_p12 }
  0x22   :  { %p932_p1 = pnand %p931_p0, %p925_p11 }
  0x24   :  { %935 = shalt.err (!%p932_p1)
}
  0x25   :  { %41 = dma.hbm_to_vmem [thread:$0]  %s1081_s2, 512, %s36_s13, [#allocation7], %s965_s8, %s965_s8, %s966_s9  }
  0x26   :  { %958 = dma.done.wait [#allocation4], 256  }
  0x27   :  { %959 = vsyncadd [#allocation4], 4294967040 }
  0x28   :  { %960 = dma.done.wait [#allocation7], 512  }
  0x29   :  { %961 = vsyncadd [#allocation7], 4294966784  ;;  %vm67_vm0 = vcmask 261120   ;;  %v56_v1 = vld [vmem:[#allocation6] sm:$0xff]  ;;  %v57_v2 = vld [vmem:[#allocation6 + $0x8] sm:$0xff]  ;;  %v968_v48 = vmov 0   ;;  %v633_v63 = vlaneseq }
  0x2a   :  { %v58_v3 = vld [vmem:[#allocation6 + $0x10] sm:$0xff]  ;;  %v75_v4 = vand.u32 4294901760, %v56_v1  ;;  %v78_v5 = vand.u32 4294901760, %v57_v2  ;;  %v59_v6 = vld [vmem:[#allocation6 + $0x18] sm:$0xff]  ;;  %v713_v47 = vld [vmem:[#allocation2] ss:$0 sm:$0xff]  ;;  %882 = vset.pattern.permute.xlu1 %v968_v48  ;;  %883 = vset.pattern.permute.xlu0 %v968_v48 }
  0x2b   :  { %v81_v7 = vand.u32 4294901760, %v58_v3  ;;  %v1032_v8 = vld [vmem:[#allocation3] sm:$0xff]  ;;  %v1034_v9 = vld [vmem:[#allocation3 + $0x8] sm:$0xff]  ;;  %v84_v10 = vand.u32 4294901760, %v59_v6  ;;  %624 = vperm.xlu1 %882, %v713_v47   ;;  %v711_v49 = vld [vmem:[%s1082_s3] ss:$0 sm:$0xff] }
  0x2c   :  { %v69_v11 = vsel %vm67_vm0, %v1032_v8, 0  ;;  %v72_v12 = vsel %vm67_vm0, %v1034_v9, 0  ;;  %v816_v13 = vpack.c.bf16 %v78_v5, %v75_v4  ;;  %v165_v16 = vsub.f32 %v56_v1, %v75_v4  ;;  %v712_v58 = vld [vmem:[%s1083_s4] ss:$0 sm:$0xff] }
  0x2d   :  { %v1040_v14 = vand.u32 4294901760, %v69_v11  ;;  %v1042_v15 = vand.u32 4294901760, %v72_v12  ;;  %v820_v17 = vpack.c.bf16 %v84_v10, %v81_v7  ;;  %v172_v18 = vsub.f32 %v57_v2, %v78_v5 }
  0x2e   :  { %v179_v19 = vsub.f32 %v58_v3, %v81_v7  ;;  %v186_v20 = vsub.f32 %v59_v6, %v84_v10  ;;  %817 = vmatprep.subr.bf16.mxu1 %v816_v13  ;;  %841 = vmatprep.subr.bf16.mxu0 %v816_v13  ;;  %v166_v23 = vand.u32 4294901760, %v165_v16  ;;  %v634_v0 = vand.u32 127, %v633_v63  ;;  %v629_v7 = vld [vmem:[%s1080_s1] sm:$0x3]  ;;  %s969_s1 = smov [#allocation8]  }
  0x2f   :  { %v144_v21 = vsub.f32 %v69_v11, %v1040_v14  ;;  %v154_v22 = vsub.f32 %v72_v12, %v1042_v15  ;;  %819 = vmatpush3.bf16.msra.mxu1 %v816_v13  ;;  %843 = vmatpush3.bf16.msra.mxu0 %v816_v13  ;;  %v173_v24 = vand.u32 4294901760, %v172_v18  ;;  %v832_v45 = vpack.c.bf16 %v172_v18, %v165_v16  ;;  %s701_s4 = sshll.u32 %s969_s1, 4  ;;  %s702_s4 = int_to_ptr.vmem [resolvable:$true] %s701_s4 }
  0x30   :  { %v180_v25 = vand.u32 4294901760, %v179_v19  ;;  %v187_v26 = vand.u32 4294901760, %v186_v20  ;;  %821 = vmatprep.subr.bf16.mxu1 %v820_v17  ;;  %845 = vmatprep.subr.bf16.mxu0 %v820_v17  ;;  %v167_v29 = vsub.f32 %v165_v16, %v166_v23  ;;  %v836_v46 = vpack.c.bf16 %v186_v20, %v179_v19  ;;  %s936_s27 = scalar_lea.vmem %s702_s4, 32  ;;  %p941_p3 = scmp.lt.s32.totalorder %s702_s4, %s702_s4 }
  0x31   :  { %v145_v27 = vand.u32 4294901760, %v144_v21  ;;  %v155_v28 = vand.u32 4294901760, %v154_v22  ;;  %v174_v30 = vsub.f32 %v172_v18, %v173_v24  ;;  %v848_v31 = vpack.c.bf16 %v173_v24, %v166_v23  ;;  %p937_p2 = scmp.ne.s32.totalorder %s702_s4, %s936_s27  ;;  %p942_p4 = scmp.lt.s32.totalorder %s936_s27, %s936_s27 }
  0x32   :  { %v181_v32 = vsub.f32 %v179_v19, %v180_v25  ;;  %v188_v33 = vsub.f32 %v186_v20, %v187_v26  ;;  %v168_v36 = vand.u32 4294901760, %v167_v29  ;;  %v852_v44 = vpack.c.bf16 %v187_v26, %v180_v25 }
  0x33   :  { %v146_v34 = vsub.f32 %v144_v21, %v145_v27  ;;  %791 = vmatprep.mubr.f32.mxu0 %v145_v27  ;;  %v156_v35 = vsub.f32 %v154_v22, %v155_v28  ;;  %823 = vmatpush3.bf16.msra.mxu1 %v820_v17  ;;  %v175_v37 = vand.u32 4294901760, %v174_v30  ;;  %v636_v1 = vshrl.u32 %v633_v63, 7  ;;  %p943_p5 = por %p942_p4, %p941_p3 }
  0x34   :  { %847 = vmatpush3.bf16.msra.mxu0 %v820_v17  ;;  %v182_v38 = vand.u32 4294901760, %v181_v32  ;;  %v189_v39 = vand.u32 4294901760, %v188_v33  ;;  %vm643_vm1 = vcmask 1041409   ;;  %vm630_vm2 = vcmp.eq.f32.partialorder %v629_v7, 0.0 }
  0x35   :  { %v147_v40 = vand.u32 4294901760, %v146_v34  ;;  %v157_v41 = vand.u32 4294901760, %v156_v35  ;;  %849 = vmatprep.subr.bf16.mxu0 %v848_v31  ;;  %v824_v42 = vpack.c.bf16 %v175_v37, %v168_v36  ;;  %v637_v4 = vsub.s32 %v634_v0, %v636_v1  ;;  %p944_p6 = pnand %p943_p5, %p937_p2 }
  0x36   :  { %v828_v43 = vpack.c.bf16 %v189_v39, %v182_v38  ;;  %vm647_vm3 = vcmask 58368   ;;  %v668_v26 = vsub.s32 1, %v636_v1  ;;  %vm693_vm4 = vcmask 254976  }
  0x37   :  { %758 = vmatprep.mubr.f32.mxu1 %v147_v40  ;;  %792 = vmatmul.mubr.f32.vlgmr.msra.gmra.mrb[0].mxu0 %v155_v28 }
  0x38   :  { %759 = vmatmul.mubr.f32.vlgmr.msra.gmra.mrb[0].mxu1 %v157_v41  ;;  %825 = vmatprep.subr.bf16.mxu1 %v824_v42 }
  0x39   :  { %827 = vmatpush3.bf16.msra.mxu1 %v824_v42  ;;  %851 = vmatpush3.bf16.msra.mxu0 %v848_v31 }
  0x3a   :  { %829 = vmatprep.subr.bf16.mxu1 %v828_v43  ;;  %853 = vmatprep.subr.bf16.mxu0 %v852_v44 }
  0x3b   :  { %769 = vmatprep.mubr.f32.mxu1 %v1040_v14  ;;  %802 = vmatprep.mubr.f32.mxu0 %v1040_v14 }
  0x3d   :  { %831 = vmatpush3.bf16.msra.mxu1 %v828_v43  ;;  %855 = vmatpush3.bf16.msra.mxu0 %v852_v44 }
  0x3e   :  { %833 = vmatprep.subr.bf16.mxu1 %v832_v45  ;;  %857 = vmatprep.subr.bf16.mxu0 %v816_v13 }
  0x40   :  { %770 = vmatmul.mubr.f32.vlgmr.msra.gmra.mrb[0].mxu1 %v1042_v15  ;;  %803 = vmatmul.mubr.f32.vlgmr.msra.gmra.mrb[0].mxu0 %v1042_v15 }
  0x41   :  { %835 = vmatpush3.bf16.msra.mxu1 %v832_v45  ;;  %859 = vmatpush3.bf16.msra.mxu0 %v816_v13 }
  0x42   :  { %837 = vmatprep.subr.bf16.mxu1 %v836_v46  ;;  %861 = vmatprep.subr.bf16.mxu0 %v820_v17 }
  0x43   :  { %780 = vmatprep.mubr.f32.mxu1 %v144_v21  ;;  %813 = vmatprep.mubr.f32.mxu0 %v1040_v14 }
  0x45   :  { %839 = vmatpush3.bf16.msra.mxu1 %v836_v46  ;;  %863 = vmatpush3.bf16.msra.mxu0 %v820_v17 }
  0x48   :  { %781 = vmatmul.mubr.f32.vlgmr.msra.gmra.mrb[0].mxu1 %v154_v22  ;;  %814 = vmatmul.mubr.f32.vlgmr.msra.gmra.mrb[0].mxu0 %v1042_v15  ;;  %v661_v22 = vsub.s32 0, %v636_v1 }
  0xaa   :  { %v625_v2 = vpop.permute.xlu1 %624 }
 0x11b   :  { %v782_v50 = vpop.f32.mrb[0].mxu1  ;;  %v815_v51 = vpop.f32.mrb[0].mxu0 }
 0x11c   :  { %v864_v52 = vadd.f32 %v782_v50, %v711_v49  ;;  %v336_v53 = vpop.f32.mrb[1].mxu1  ;;  %v592_v54 = vpop.f32.mrb[1].mxu0 }
 0x11d   :  { %v866_v55 = vadd.f32 %v711_v49, %v336_v53 }
 0x11e   :  { %v865_v56 = vadd.f32 %v864_v52, %v815_v51 }
 0x11f   :  { %v867_v57 = vadd.f32 %v866_v55, %v592_v54 }
 0x121   :  { %884 = vtanh.f32 %v867_v57 }
 0x122   :  { %886 = vtanh.f32 %v865_v56 }
 0x12b   :  { %v885_v59 = vpop.eup %884 }
 0x12c   :  { %v611_v60 = vmul.f32 %v885_v59, %v712_v58  ;;  %v887_v61 = vpop.eup %886 }
 0x12d   :  { %v612_v62 = vmul.f32 %v887_v61, %v712_v58 }
 0x12e   :  { %613 = vadd.xlane.f32.xlu0 %v611_v60 }
 0x132   :  { %615 = vadd.xlane.f32.xlu0 %v612_v62 }
 0x1bb   :  { %v614_v3 = vpop.xlane.xlu0 %613 }
 0x1bc   :  { %v627_v5 = vadd.f32 %v625_v2, %v614_v3 }
 0x1be   :  { %v638_v11 = vrot.slane %v627_v5, %v637_v4 }
 0x1bf   :  { %v616_v6 = vpop.xlane.xlu0 %615 }
 0x1c0   :  { %v628_v10 = vadd.f32 %v625_v2, %v616_v6 }
 0x1c2   :  { %v642_v12 = vrot.slane %v628_v10, %v637_v4 }
 0x1c4   :  { %v644_v13 = vsel %vm643_vm1, %v642_v12, %v638_v11 }
 0x1c5   :  { %v646_v14 = vsel %vm630_vm2, -1e+09, %v644_v13 }
 0x1c6   :  { %v648_v15 = vsel %vm647_vm3, %v646_v14, -inf }
 0x1c7   :  { %649 = vmax.xlane.f32.xlu1 %v648_v15 }
 0x254   :  { %v650_v16 = vpop.xlane.xlu1 %649 }
 0x255   :  { %v651_v17 = vsub.f32 %v646_v14, %v650_v16 }
 0x257   :  { %v652_v18 = vmul.f32 1.442695, %v651_v17 }
 0x259   :  { %888 = vpow2.f32 %v652_v18 }
 0x263   :  { %v889_v19 = vpop.eup %888 }
 0x264   :  { %v654_v20 = vsel %vm647_vm3, %v889_v19, 0.0 }
 0x265   :  { %655 = vadd.xlane.f32.xlu0 %v654_v20 }
 0x2f2   :  { %v656_v21 = vpop.xlane.xlu0 %655 }
 0x2f3   :  { %890 = vrcp.f32 %v656_v21 }
 0x2fd   :  { %v891_v23 = vpop.eup %890 }
 0x2fe   :  { %v658_v24 = vmul.f32 %v891_v23, %v889_v19 }
 0x300   :  { %v662_v25 = vrot.slane %v658_v24, %v661_v22  ;;  %v669_v27 = vrot.slane %v658_v24, %v668_v26 }
 0x302   :  { %664 = vbcast.lane.b32.xlu0 %v662_v25, 256 }
 0x306   :  { %671 = vbcast.lane.b32.xlu0 %v669_v27, 256 }
 0x374   :  { %v665_v28 = vpop.permute.xlu0 %664 }
 0x375   :  { %v673_v29 = vmul.f32 %v665_v28, %v1032_v8 }
 0x377   :  { %v675_v30 = vsel %vm67_vm0, %v673_v29, 0.0 }
 0x378   :  { %v676_v31 = vrot.slane %v675_v30, 4  ;;  %v672_v32 = vpop.permute.xlu0 %671 }
 0x379   :  { %v674_v33 = vmul.f32 %v672_v32, %v1034_v9 }
 0x37a   :  { %v677_v34 = vadd.f32 %v676_v31, %v675_v30 }
 0x37b   :  { %v682_v35 = vsel %vm67_vm0, %v674_v33, 0.0 }
 0x37c   :  { %v678_v36 = vrot.slane %v677_v34, 2  ;;  %v683_v37 = vrot.slane %v682_v35, 4 }
 0x37e   :  { %v679_v38 = vadd.f32 %v678_v36, %v677_v34  ;;  %v684_v39 = vadd.f32 %v683_v37, %v682_v35 }
 0x380   :  { %v685_v40 = vrot.slane %v684_v39, 2  ;;  %v680_v41 = vrot.slane %v679_v38, 1 }
 0x382   :  { %v686_v42 = vadd.f32 %v685_v40, %v684_v39  ;;  %v681_v8 = vadd.f32 %v680_v41, %v679_v38 }
 0x384   :  { %v687_v43 = vrot.slane %v686_v42, 1 }
 0x386   :  { %v688_v44 = vadd.f32 %v687_v43, %v686_v42 }
 0x388   :  { %v691_v45 = vsel %vm643_vm1, %v688_v44, %v681_v8 }
 0x389   :  { %694 = vst.msk [vmem:[#allocation8] sm:$0x3] %vm693_vm4, %v691_v45 }
 0x38a   :  { %947 = shalt.err (!%p944_p6)
}
 0x38b   :  { %s948_s30 = scalar_lea.hbm %s1085_s6, 32 }
 0x38c   :  { %p949_p7 = scmp.ne.s32.totalorder %s1085_s6, %s948_s30  ;;  %p952_p8 = scmp.lt.u32.totalorder %s948_s30, %s1085_s6 }
 0x38e   :  { %p954_p9 = pnand %p952_p8, %p949_p7 }
 0x390   :  { %957 = shalt.err (!%p954_p9)
}
 0x391   :  { %704 = dma.vmem_to_hbm [thread:$0]  %s702_s4, 32, %s1085_s6, [#allocation5]  }
 0x392   :  { %962 = dma.done.wait [#allocation5], 32  }
 0x393   :  { %963 = vsyncadd [#allocation5], 4294967264 }
 0x394   :  { %708 = vsyncpa [#allocation4], 1 }
 0x395   :  { %709 = vsyncpa [#allocation7], 1 }
 0x396   :  { %710 = vsyncpa [#allocation5], 1 }

</bundles_post_ra>
